<compile_context>
chip_gen: v5e
topology: v5e:2x2
jax: 0.10.0
libtpu: 0.0.40
codegen_flags: <defaults>
</compile_context>

<pallas_src>
import functools

import jax
import jax.numpy as jnp
from jax import lax
from jax.experimental import pallas as pl
from jax.experimental.pallas import tpu as pltpu

INPUT_DIM = 10
HIDDEN_DIM = 64
OUTPUT_DIM = 2

# Max batch tile on the lane axis (multiple of 128).  8192 keeps per-step VMEM
# well inside v5e's 16 MiB default scoped limit while amortizing step overhead.
TB_CAP = 8192


def _round_up(x, m):
    return (x + m - 1) // m * m


def _cdiv(a, b):
    return -(-a // b)


def _default_epilogue_dtype():
    """bf16 bias-add/ReLU on chips with a bf16 VPU (v6e/v7x), f32 otherwise."""
    try:
        kind = jax.devices()[0].device_kind.lower()
    except Exception:
        return jnp.bfloat16
    for old in ("v2", "v3", "v4", "v5"):
        if old in kind:
            return jnp.float32
    return jnp.bfloat16


def _choose_tiling(batch, tb_cap):
    """Pick (tile, padded_batch, n_steps) for the lane-axis batch.

    - tile is a multiple of 128 and <= tb_cap,
    - padding is minimized (tile is a near-divisor of round_up(B, 128), no
      double round-up),
    - >= 2 grid steps whenever the batch allows it, so both v7x TensorCores
      get work under dimension_semantics=("parallel",).
    """
    b128 = _round_up(batch, 128)
    n_steps = max(_cdiv(b128, tb_cap), 1)
    if n_steps == 1 and b128 >= 256:
        n_steps = 2
    tb = _round_up(_cdiv(b128, n_steps), 128)
    return tb, tb * n_steps, n_steps


def _mlp_kernel(xT_ref, w1_ref, w2_ref, w3_ref, b23_ref, o_ref, *,
                acc_dtype, precision):
    # xT_ref : (IN+1, TB)   compute dtype; row IN is constant 1 (folds b1).
    # w1_ref : (H, IN+1)    compute dtype (torch layout, b1 as extra column).
    # w2_ref : (H, H)       compute dtype.
    # w3_ref : (OUT, H)     compute dtype.
    # b23_ref: (H+OUT, 1)   acc_dtype (b2 | b3 stacked on sublanes).
    # o_ref  : (OUT, TB)    f32 (lane-dense: TB is a multiple of 128).
    xT = xT_ref[...]

    # Layer 1: (H, IN+1) @ (IN+1, TB) -> (H, TB); b1 already folded in.
    h1 = jnp.dot(w1_ref[...], xT,
                 preferred_element_type=acc_dtype, precision=precision)
    h1 = jnp.maximum(h1, 0.0).astype(w2_ref.dtype)

    b2 = b23_ref[0:HIDDEN_DIM, :]
    b3 = b23_ref[HIDDEN_DIM:HIDDEN_DIM + OUTPUT_DIM, :]

    # Layer 2: (H, H) @ (H, TB) -> (H, TB).
    h2 = jnp.dot(w2_ref[...], h1,
                 preferred_element_type=acc_dtype, precision=precision) + b2
    h2 = jnp.maximum(h2, 0.0).astype(w3_ref.dtype)

    # Layer 3: (OUT, H) @ (H, TB) -> (OUT, TB).
    out = jnp.dot(w3_ref[...], h2,
                  preferred_element_type=acc_dtype, precision=precision) + b3
    o_ref[...] = out.astype(o_ref.dtype)


def pack_params(params, compute_dtype=jnp.bfloat16, bias_dtype=jnp.float32):
    """Torch-layout params -> kernel operands (b1 folded into w1)."""
    w1_aug = jnp.concatenate(
        [params["w1"], params["b1"].reshape(HIDDEN_DIM, 1)], axis=1
    ).astype(compute_dtype)                                   # (H, IN+1)
    b23 = jnp.concatenate(
        [params["b2"].reshape(HIDDEN_DIM, 1),
         params["b3"].reshape(OUTPUT_DIM, 1)], axis=0
    ).astype(bias_dtype)                                      # (H+OUT, 1)
    return (w1_aug,
            params["w2"].astype(compute_dtype),
            params["w3"].astype(compute_dtype),
            b23)


@functools.partial(jax.jit,
                   static_argnames=("compute_dtype", "epilogue_dtype", "tb_cap"))
def _forward_jit(x, params, *, compute_dtype, epilogue_dtype, tb_cap):
    B = x.shape[0]
    assert x.shape[1] == INPUT_DIM

    tb, b_padded, n_steps = _choose_tiling(B, tb_cap)

    acc_dtype = epilogue_dtype
    if compute_dtype == jnp.dtype(jnp.float32):
        acc_dtype = jnp.dtype(jnp.float32)
    precision = (lax.Precision.HIGHEST
                 if compute_dtype == jnp.dtype(jnp.float32) else None)

    # Feature-major input with a constant-1 row appended (folds b1 into w1);
    # batch lives on the lane axis.
    # TODO(synk): accept x already in (IN, B) feature-major layout (and return
    # (OUT, B)) to drop these wrapper-side transpose/pad/slice HBM passes.
    xT = jnp.concatenate(
        [x.T.astype(compute_dtype),
         jnp.ones((1, B), compute_dtype)], axis=0)            # (IN+1, B)
    xT = jnp.pad(xT, ((0, 0), (0, b_padded - B)))             # (IN+1, b_padded)

    w1, w2, w3, b23 = pack_params(params, compute_dtype, acc_dtype)

    flops = 2 * b_padded * ((INPUT_DIM + 1) * HIDDEN_DIM
                            + HIDDEN_DIM * HIDDEN_DIM
                            + HIDDEN_DIM * OUTPUT_DIM)
    bytes_accessed = ((INPUT_DIM + 1) * b_padded * jnp.dtype(compute_dtype).itemsize
                      + OUTPUT_DIM * b_padded * 4
                      + (w1.size + w2.size + w3.size) * jnp.dtype(compute_dtype).itemsize
                      + b23.size * jnp.dtype(acc_dtype).itemsize)

    kernel = functools.partial(_mlp_kernel, acc_dtype=acc_dtype,
                               precision=precision)

    out = pl.pallas_call(
        kernel,
        out_shape=jax.ShapeDtypeStruct((OUTPUT_DIM, b_padded), jnp.float32),
        grid=(n_steps,),
        in_specs=[
            # x^T batch tile marches along the grid (lane axis = batch).
            pl.BlockSpec((INPUT_DIM + 1, tb), lambda i: (0, i)),
            # Weights / packed bias: constant block index -> resident in VMEM.
            pl.BlockSpec((HIDDEN_DIM, INPUT_DIM + 1), lambda i: (0, 0)),
            pl.BlockSpec((HIDDEN_DIM, HIDDEN_DIM), lambda i: (0, 0)),
            pl.BlockSpec((OUTPUT_DIM, HIDDEN_DIM), lambda i: (0, 0)),
            pl.BlockSpec((HIDDEN_DIM + OUTPUT_DIM, 1), lambda i: (0, 0)),
        ],
        out_specs=pl.BlockSpec((OUTPUT_DIM, tb), lambda i: (0, i)),
        compiler_params=pltpu.CompilerParams(
            dimension_semantics=("parallel",)),   # v7x: 2 TCs share batch tiles
        cost_estimate=pl.CostEstimate(flops=flops, transcendentals=0,
                                      bytes_accessed=bytes_accessed),
    )(xT, w1, w2, w3, b23)

    return out[:, :B].T                                       # (B, OUTPUT_DIM)


def control_mlp_forward(x, params, *, compute_dtype=jnp.bfloat16,
                        epilogue_dtype=None, tb_cap=TB_CAP):
    """x: (B, INPUT_DIM) -> (B, OUTPUT_DIM) float32. params: torch-layout dict."""
    if epilogue_dtype is None:
        epilogue_dtype = _default_epilogue_dtype()
    return _forward_jit(x, params,
                        compute_dtype=jnp.dtype(compute_dtype),
                        epilogue_dtype=jnp.dtype(epilogue_dtype),
                        tb_cap=int(tb_cap))


def init_params(key, input_dim=INPUT_DIM, hidden_dim=HIDDEN_DIM,
                output_dim=OUTPUT_DIM):
    """torch.nn.Linear default init: U[-1/sqrt(fan_in), 1/sqrt(fan_in)].

    Weights are (out_features, in_features), biases are (out_features,),
    exactly like the PyTorch module.
    """
    keys = jax.random.split(key, 6)

    def uniform(k, shape, fan_in):
        bound = 1.0 / jnp.sqrt(float(fan_in))
        return jax.random.uniform(k, shape, jnp.float32, -bound, bound)

    return {
        "w1": uniform(keys[0], (hidden_dim, input_dim), input_dim),
        "b1": uniform(keys[1], (hidden_dim,), input_dim),
        "w2": uniform(keys[2], (hidden_dim, hidden_dim), hidden_dim),
        "b2": uniform(keys[3], (hidden_dim,), hidden_dim),
        "w3": uniform(keys[4], (output_dim, hidden_dim), hidden_dim),
        "b3": uniform(keys[5], (output_dim,), hidden_dim),
    }


def _reference_forward(x, params):
    h1 = jnp.maximum(x @ params["w1"].T + params["b1"], 0.0)
    h2 = jnp.maximum(h1 @ params["w2"].T + params["b2"], 0.0)
    return h2 @ params["w3"].T + params["b3"]


if __name__ == "__main__":
    key = jax.random.PRNGKey(0)
    k_param, k_x1, k_x2 = jax.random.split(key, 3)

    params = init_params(k_param)

    # Small batch: single-step grid.
    batch = 8
    x = jax.random.normal(k_x1, (batch, INPUT_DIM), dtype=jnp.float32)
    ref = _reference_forward(x, params)

    # Full-precision path (f32 MXU, precision=HIGHEST): tight check.
    out_f32 = jax.block_until_ready(
        control_mlp_forward(x, params, compute_dtype=jnp.float32))
    assert out_f32.shape == (batch, OUTPUT_DIM)
    assert jnp.allclose(out_f32, ref, atol=1e-4, rtol=1e-4)

    # Default bf16-MXU path (bf16 epilogue on v6e/v7x): looser tolerance.
    out_bf16 = jax.block_until_ready(control_mlp_forward(x, params))
    assert out_bf16.shape == (batch, OUTPUT_DIM)
    assert jnp.allclose(out_bf16, ref, atol=5e-2, rtol=5e-2)

    # Non-multiple-of-128 batch: exercises the 2-step padded grid path.
    batch2 = 300
    x2 = jax.random.normal(k_x2, (batch2, INPUT_DIM), dtype=jnp.float32)
    ref2 = _reference_forward(x2, params)
    out2 = jax.block_until_ready(control_mlp_forward(x2, params))
    assert out2.shape == (batch2, OUTPUT_DIM)
    assert jnp.allclose(out2, ref2, atol=5e-2, rtol=5e-2)

    print("KERNEL_OK")
</pallas_src>

<mosaic_0001>
module attributes {stable_mosaic.version = 11 : i64} {
  func.func @_mlp_kernel(%arg0: i32, %arg1: memref<11x128xf32, #tpu.memory_space<vmem>>, %arg2: memref<64x11xf32, #tpu.memory_space<vmem>>, %arg3: memref<64x64xf32, #tpu.memory_space<vmem>>, %arg4: memref<2x64xf32, #tpu.memory_space<vmem>>, %arg5: memref<66x1xf32, #tpu.memory_space<vmem>>, %arg6: memref<2x128xf32, #tpu.memory_space<vmem>>) attributes {dimension_semantics = [#tpu.dimension_semantics<parallel>], iteration_bounds = array<i64: 1>, scalar_prefetch = 0 : i64, scratch_operands = 0 : i64, tpu.core_type = #tpu.core_type<tc>, window_params = [{transform_indices = @transform_0, window_bounds = array<i64: 11, 128>}, {pipeline_mode = #tpu.pipeline_mode<synchronous>, transform_indices = @transform_1, window_bounds = array<i64: 64, 11>}, {pipeline_mode = #tpu.pipeline_mode<synchronous>, transform_indices = @transform_2, window_bounds = array<i64: 64, 64>}, {pipeline_mode = #tpu.pipeline_mode<synchronous>, transform_indices = @transform_3, window_bounds = array<i64: 2, 64>}, {pipeline_mode = #tpu.pipeline_mode<synchronous>, transform_indices = @transform_4, window_bounds = array<i64: 66, 1>}, {transform_indices = @transform_5, window_bounds = array<i64: 2, 128>}]} {
    %c0 = arith.constant 0 : index
    %c0_0 = arith.constant 0 : index
    %0 = vector.load %arg1[%c0, %c0_0] : memref<11x128xf32, #tpu.memory_space<vmem>>, vector<11x128xf32>
    %c0_1 = arith.constant 0 : index
    %c0_2 = arith.constant 0 : index
    %1 = vector.load %arg2[%c0_1, %c0_2] : memref<64x11xf32, #tpu.memory_space<vmem>>, vector<64x11xf32>
    %cst = arith.constant dense<0.000000e+00> : vector<64x128xf32>
    %2 = tpu.matmul %1, %0, %cst {dimension_numbers = #tpu.dot_dimension_numbers<[1], [0], [0], [1], [0, 0, 1, 1], [], []>, precision = #tpu.contract_precision<fp32>} : vector<64x11xf32>, vector<11x128xf32>, vector<64x128xf32> -> vector<64x128xf32>
    %cst_3 = arith.constant 0.000000e+00 : f32
    %3 = vector.broadcast %cst_3 : f32 to vector<64x128xf32>
    %4 = arith.maximumf %2, %3 : vector<64x128xf32>
    %c0_4 = arith.constant 0 : index
    %c0_5 = arith.constant 0 : index
    %5 = vector.load %arg5[%c0_4, %c0_5] : memref<66x1xf32, #tpu.memory_space<vmem>>, vector<64x1xf32>
    %c64 = arith.constant 64 : index
    %c0_6 = arith.constant 0 : index
    %6 = vector.load %arg5[%c64, %c0_6] : memref<66x1xf32, #tpu.memory_space<vmem>>, vector<2x1xf32>
    %c0_7 = arith.constant 0 : index
    %c0_8 = arith.constant 0 : index
    %7 = vector.load %arg3[%c0_7, %c0_8] : memref<64x64xf32, #tpu.memory_space<vmem>>, vector<64x64xf32>
    %cst_9 = arith.constant dense<0.000000e+00> : vector<64x128xf32>
    %8 = tpu.matmul %7, %4, %cst_9 {dimension_numbers = #tpu.dot_dimension_numbers<[1], [0], [0], [1], [0, 0, 1, 1], [], []>, precision = #tpu.contract_precision<fp32>} : vector<64x64xf32>, vector<64x128xf32>, vector<64x128xf32> -> vector<64x128xf32>
    %9 = vector.broadcast %5 : vector<64x1xf32> to vector<64x128xf32>
    %10 = arith.addf %8, %9 : vector<64x128xf32>
    %cst_10 = arith.constant 0.000000e+00 : f32
    %11 = vector.broadcast %cst_10 : f32 to vector<64x128xf32>
    %12 = arith.maximumf %10, %11 : vector<64x128xf32>
    %c0_11 = arith.constant 0 : index
    %c0_12 = arith.constant 0 : index
    %13 = vector.load %arg4[%c0_11, %c0_12] : memref<2x64xf32, #tpu.memory_space<vmem>>, vector<2x64xf32>
    %cst_13 = arith.constant dense<0.000000e+00> : vector<2x128xf32>
    %14 = tpu.matmul %13, %12, %cst_13 {dimension_numbers = #tpu.dot_dimension_numbers<[1], [0], [0], [1], [0, 0, 1, 1], [], []>, precision = #tpu.contract_precision<fp32>} : vector<2x64xf32>, vector<64x128xf32>, vector<2x128xf32> -> vector<2x128xf32>
    %15 = vector.broadcast %6 : vector<2x1xf32> to vector<2x128xf32>
    %16 = arith.addf %14, %15 : vector<2x128xf32>
    %c0_14 = arith.constant 0 : index
    %c0_15 = arith.constant 0 : index
    %17 = vector.load %arg6[%c0_14, %c0_15] : memref<2x128xf32, #tpu.memory_space<vmem>>, vector<2x128xf32>
    tpu.vector_store %arg6[%c0_14, %c0_15], %16 {strides = array<i32>} : memref<2x128xf32, #tpu.memory_space<vmem>>, vector<2x128xf32>,
    return
  }
  func.func @transform_0(%arg0: i32) -> (i32, i32) {
    %c0_i32 = arith.constant 0 : i32
    %c0_i32_0 = arith.constant 0 : i32
    return %c0_i32, %arg0 : i32, i32
  }
  func.func @transform_1(%arg0: i32) -> (i32, i32) {
    %c0_i32 = arith.constant 0 : i32
    %c0_i32_0 = arith.constant 0 : i32
    %c0_i32_1 = arith.constant 0 : i32
    return %c0_i32, %c0_i32_0 : i32, i32
  }
  func.func @transform_2(%arg0: i32) -> (i32, i32) {
    %c0_i32 = arith.constant 0 : i32
    %c0_i32_0 = arith.constant 0 : i32
    %c0_i32_1 = arith.constant 0 : i32
    return %c0_i32, %c0_i32_0 : i32, i32
  }
  func.func @transform_3(%arg0: i32) -> (i32, i32) {
    %c0_i32 = arith.constant 0 : i32
    %c0_i32_0 = arith.constant 0 : i32
    %c0_i32_1 = arith.constant 0 : i32
    return %c0_i32, %c0_i32_0 : i32, i32
  }
  func.func @transform_4(%arg0: i32) -> (i32, i32) {
    %c0_i32 = arith.constant 0 : i32
    %c0_i32_0 = arith.constant 0 : i32
    %c0_i32_1 = arith.constant 0 : i32
    return %c0_i32, %c0_i32_0 : i32, i32
  }
  func.func @transform_5(%arg0: i32) -> (i32, i32) {
    %c0_i32 = arith.constant 0 : i32
    %c0_i32_0 = arith.constant 0 : i32
    return %c0_i32, %arg0 : i32, i32
  }
}

</mosaic_0001>

<bundles_post_ra>
// kernel: _forward_jit.1
= control target key start
LH: loop header
LB: loop body
LE: loop exit
PB: predicated region body
PF: predicated region fallthrough
CT: control target
= control target key end

     0   :  { %vm55_vm0 = vcmask 1042432   ;;  %vm30_vm1 = vcmask 89088   ;;  %vm500_vm2 = vcmask 523264   ;;  %s1682_s0 = inlined_call_operand.vmem [shape: f32[11,128], index: 0, kind: input, shape index: {}]   ;;  %s1683_s1 = inlined_call_operand.vmem [shape: f32[64,11], index: 1, kind: input, shape index: {}]   ;;  %s1684_s2 = inlined_call_operand.vmem [shape: f32[64,64], index: 2, kind: input, shape index: {}]   ;;  %s1685_s4 = inlined_call_operand.vmem [shape: f32[66,1], index: 4, kind: input, shape index: {}]   ;;  %s1686_s3 = inlined_call_operand.vmem [shape: f32[2,64], index: 3, kind: input, shape index: {}]   ;;  %s1687_s5 = inlined_call_operand.vmem [shape: f32[2,128], index: 5, kind: output, shape index: {}]  }
   0x1   :  { %v21_v0 = vld [vmem:[%s1682_s0 + $0x8] sm:$0x7]  ;;  %v20_v1 = vld [vmem:[%s1682_s0] sm:$0xff]  ;;  %v29_v6 = vld [vmem:[%s1683_s1 + $0x38] sm:$0xff] }
   0x2   :  { %v22_v2 = vld [vmem:[%s1683_s1] sm:$0xff]  ;;  %v57_v3 = vsel %vm55_vm0, %v21_v0, 0  ;;  %v75_v4 = vand.u32 4294901760, %v20_v1  ;;  %v23_v7 = vld [vmem:[%s1683_s1 + $0x8] sm:$0xff]  ;;  %v53_v10 = vsel %vm30_vm1, %v29_v6, 0  ;;  %v24_v12 = vld [vmem:[%s1683_s1 + $0x10] sm:$0xff] }
   0x3   :  { %v32_v5 = vsel %vm30_vm1, %v22_v2, 0  ;;  %v73_v8 = vand.u32 4294901760, %v57_v3  ;;  %v35_v11 = vsel %vm30_vm1, %v23_v7, 0  ;;  %v1300_v13 = vand.u32 4294901760, %v53_v10  ;;  %v25_v34 = vld [vmem:[%s1683_s1 + $0x18] sm:$0xff]  ;;  %v26_v42 = vld [vmem:[%s1683_s1 + $0x20] sm:$0xff] }
   0x4   :  { %v1293_v9 = vand.u32 4294901760, %v32_v5  ;;  %v163_v14 = vsub.f32 %v20_v1, %v75_v4  ;;  %v1302_v15 = vand.u32 4294901760, %v35_v11  ;;  %v38_v21 = vsel %vm30_vm1, %v24_v12, 0  ;;  %v27_v49 = vld [vmem:[%s1683_s1 + $0x28] sm:$0xff]  ;;  %v28_v56 = vld [vmem:[%s1683_s1 + $0x30] sm:$0xff] }
   0x5   :  { %74 = vmatpush.msra.mxu0 %v73_v8  ;;  %1238 = vmatpush.msra.mxu2 %v73_v8  ;;  %v157_v17 = vsub.f32 %v57_v3, %v73_v8  ;;  %v1306_v18 = vsub.f32 %v53_v10, %v1300_v13  ;;  %v1311_v29 = vand.u32 4294901760, %v38_v21  ;;  %v41_v38 = vsel %vm30_vm1, %v25_v34, 0 }
   0x6   :  { %v78_v16 = vsub.f32 %v32_v5, %v1293_v9  ;;  %v164_v19 = vand.u32 4294901760, %v163_v14  ;;  %v86_v20 = vsub.f32 %v35_v11, %v1302_v15  ;;  %v1323_v41 = vand.u32 4294901760, %v41_v38 }
   0x7   :  { %76 = vmatpush.msra.mxu0 %v75_v4  ;;  %1239 = vmatpush.msra.mxu2 %v75_v4  ;;  %v158_v23 = vand.u32 4294901760, %v157_v17  ;;  %v135_v24 = vand.u32 4294901760, %v1306_v18  ;;  %v94_v37 = vsub.f32 %v38_v21, %v1311_v29  ;;  %v44_v45 = vsel %vm30_vm1, %v26_v42, 0 }
   0x8   :  { %v79_v22 = vand.u32 4294901760, %v78_v16  ;;  %v165_v25 = vsub.f32 %v163_v14, %v164_v19  ;;  %v87_v28 = vand.u32 4294901760, %v86_v20  ;;  %v102_v44 = vsub.f32 %v41_v38, %v1323_v41 }
   0x9   :  { %217 = vmatpush.msrb.mxu2 %v157_v17  ;;  %v159_v27 = vsub.f32 %v157_v17, %v158_v23  ;;  %346 = vmatpush.msrb.mxu0 %v158_v23  ;;  %v136_v30 = vsub.f32 %v1306_v18, %v135_v24  ;;  %v95_v40 = vand.u32 4294901760, %v94_v37  ;;  %v109_v48 = vand.u32 4294901760, %v44_v45 }
   0xa   :  { %v80_v26 = vsub.f32 %v78_v16, %v79_v22  ;;  %v166_v33 = vand.u32 4294901760, %v165_v25  ;;  %v88_v36 = vsub.f32 %v86_v20, %v87_v28  ;;  %v103_v47 = vand.u32 4294901760, %v102_v44 }
   0xb   :  { %220 = vmatpush.msrb.mxu2 %v163_v14  ;;  %v160_v32 = vand.u32 4294901760, %v159_v27  ;;  %350 = vmatpush.msrb.mxu0 %v164_v19  ;;  %v137_v35 = vand.u32 4294901760, %v136_v30  ;;  %v96_v43 = vsub.f32 %v94_v37, %v95_v40  ;;  %v110_v51 = vsub.f32 %v44_v45, %v109_v48 }
   0xc   :  { %v81_v31 = vand.u32 4294901760, %v80_v26  ;;  %v89_v39 = vand.u32 4294901760, %v88_v36  ;;  %v104_v50 = vsub.f32 %v102_v44, %v103_v47  ;;  %v47_v52 = vsel %vm30_vm1, %v27_v49, 0 }
   0xd   :  { %161 = vmatpush.msra.mxu1 %v160_v32  ;;  %138 = vmatmul.f32.vlgmr.msra.gmra.mxu2 %v137_v35  ;;  %v97_v46 = vand.u32 4294901760, %v96_v43  ;;  %v111_v54 = vand.u32 4294901760, %v110_v51  ;;  %v117_v55 = vand.u32 4294901760, %v47_v52  ;;  %v50_v59 = vsel %vm30_vm1, %v28_v56, 0 }
   0xe   :  { %82 = vmatmul.f32.vlgmr.msra.gmra.mxu0 %v81_v31  ;;  %1240 = vmatpush.msra.mxu3 %v160_v32  ;;  %v105_v53 = vand.u32 4294901760, %v104_v50  ;;  %v125_v62 = vand.u32 4294901760, %v50_v59 }
   0xf   :  { %167 = vmatpush.msra.mxu1 %v166_v33  ;;  %v112_v57 = vsub.f32 %v110_v51, %v111_v54  ;;  %v118_v58 = vsub.f32 %v47_v52, %v117_v55 }
  0x10   :  { %1241 = vmatpush.msra.mxu3 %v166_v33  ;;  %169 = vmatmul.f32.vlgmr.msra.gmra.mxu1 %v1293_v9  ;;  %v126_v0 = vsub.f32 %v50_v59, %v125_v62 }
  0x11   :  { %197 = vmatmul.f32.vlgmr.msra.gmra.mxu3 %v1300_v13  ;;  %399 = vmatpush.msrb.mxu1 %v73_v8  ;;  %v113_v60 = vand.u32 4294901760, %v112_v57  ;;  %v119_v61 = vand.u32 4294901760, %v118_v58 }
  0x12   :  { %277 = vmatpush.msrb.mxu3 %v73_v8  ;;  %v127_v2 = vand.u32 4294901760, %v126_v0 }
  0x13   :  { %401 = vmatpush.msrb.mxu1 %v75_v4  ;;  %v120_v63 = vsub.f32 %v118_v58, %v119_v61 }
  0x14   :  { %279 = vmatpush.msrb.mxu3 %v75_v4  ;;  %v128_v3 = vsub.f32 %v126_v0, %v127_v2 }
  0x15   :  { %223 = vmatmul.f32.vlgmr.msrb.gmra.mxu2 %v78_v16  ;;  %v121_v1 = vand.u32 4294901760, %v120_v63 }
  0x16   :  { %90 = vmatmul.f32.gmra.mxu0 %v89_v39  ;;  %v129_v4 = vand.u32 4294901760, %v128_v3 }
  0x18   :  { %173 = vmatmul.f32.gmra.mxu1 %v1302_v15 }
  0x19   :  { %283 = vmatmul.f32.vlgmr.msrb.gmra.mxu3 %v79_v22 }
  0x1d   :  { %228 = vmatmul.f32.gmra.mxu2 %v86_v20 }
  0x1e   :  { %98 = vmatmul.f32.gmra.mxu0 %v97_v46 }
  0x20   :  { %177 = vmatmul.f32.gmra.mxu1 %v1311_v29 }
  0x21   :  { %289 = vmatmul.f32.gmra.mxu3 %v87_v28 }
  0x25   :  { %233 = vmatmul.f32.gmra.mxu2 %v94_v37 }
  0x26   :  { %106 = vmatmul.f32.gmra.mxu0 %v105_v53 }
  0x28   :  { %181 = vmatmul.f32.gmra.mxu1 %v1323_v41 }
  0x29   :  { %295 = vmatmul.f32.gmra.mxu3 %v95_v40 }
  0x2d   :  { %238 = vmatmul.f32.gmra.mxu2 %v102_v44 }
  0x2e   :  { %114 = vmatmul.f32.gmra.mxu0 %v113_v60 }
  0x30   :  { %185 = vmatmul.f32.gmra.mxu1 %v109_v48 }
  0x31   :  { %301 = vmatmul.f32.gmra.mxu3 %v103_v47 }
  0x35   :  { %243 = vmatmul.f32.gmra.mxu2 %v110_v51 }
  0x36   :  { %122 = vmatmul.f32.gmra.mxu0 %v121_v1 }
  0x38   :  { %189 = vmatmul.f32.gmra.mxu1 %v117_v55 }
  0x39   :  { %307 = vmatmul.f32.gmra.mxu3 %v111_v54 }
  0x3d   :  { %248 = vmatmul.f32.gmra.mxu2 %v118_v58 }
  0x3e   :  { %130 = vmatmul.f32.gmra.mxu0 %v129_v4 }
  0x40   :  { %193 = vmatmul.f32.gmra.mxu1 %v125_v62 }
  0x41   :  { %313 = vmatmul.f32.gmra.mxu3 %v119_v61 }
  0x45   :  { %253 = vmatmul.f32.gmra.mxu2 %v126_v0 }
  0x46   :  { %352 = vmatmul.f32.vlgmr.msrb.gmra.mxu0 %v1293_v9 }
  0x48   :  { %403 = vmatmul.f32.vlgmr.msrb.gmra.mxu1 %v1293_v9 }
  0x49   :  { %319 = vmatmul.f32.gmra.mxu3 %v127_v2 }
  0x4d   :  { %258 = vmatmul.f32.gmra.mxu2 %v1306_v18 }
  0x4e   :  { %356 = vmatmul.f32.gmra.mxu0 %v1302_v15 }
  0x50   :  { %407 = vmatmul.f32.gmra.mxu1 %v1302_v15 }
  0x51   :  { %325 = vmatmul.f32.gmra.mxu3 %v135_v24 }
  0x56   :  { %360 = vmatmul.f32.gmra.mxu0 %v1311_v29 }
  0x58   :  { %411 = vmatmul.f32.gmra.mxu1 %v1311_v29 }
  0x5e   :  { %364 = vmatmul.f32.gmra.mxu0 %v1323_v41 }
  0x60   :  { %415 = vmatmul.f32.gmra.mxu1 %v1323_v41 }
  0x66   :  { %368 = vmatmul.f32.gmra.mxu0 %v109_v48 }
  0x68   :  { %419 = vmatmul.f32.gmra.mxu1 %v109_v48 }
  0x6e   :  { %372 = vmatmul.f32.gmra.mxu0 %v117_v55 }
  0x70   :  { %423 = vmatmul.f32.gmra.mxu1 %v117_v55 }
  0x76   :  { %376 = vmatmul.f32.gmra.mxu0 %v125_v62 }
  0x78   :  { %427 = vmatmul.f32.gmra.mxu1 %v125_v62 }
  0x7e   :  { %380 = vmatmul.f32.gmra.mxu0 %v1300_v13 }
  0x80   :  { %431 = vmatmul.f32.gmra.mxu1 %v1300_v13 }
  0x8b   :  { %v83_v5 = vpop.f32.mrf.mxu0 }
  0x8d   :  { %v170_v6 = vpop.f32.mrf.mxu1 }
  0x8e   :  { %v171_v29 = vadd.f32 %v170_v6, %v83_v5 }
  0x90   :  { %v139_v14 = vpop.f32.mrf.mxu2 }
  0x93   :  { %v91_v7 = vpop.f32.mrf.mxu0 }
  0x94   :  { %v198_v17 = vpop.f32.mrf.mxu3 }
  0x95   :  { %v174_v8 = vpop.f32.mrf.mxu1  ;;  %v199_v5 = vadd.f32 %v198_v17, %v139_v14 }
  0x96   :  { %v1354_v9 = vadd.f32 %v174_v8, %v91_v7 }
  0x98   :  { %v224_v20 = vpop.f32.mrf.mxu2 }
  0x99   :  { %v225_v30 = vadd.f32 %v224_v20, %v171_v29 }
  0x9b   :  { %v99_v10 = vpop.f32.mrf.mxu0 }
  0x9c   :  { %v284_v23 = vpop.f32.mrf.mxu3 }
  0x9d   :  { %v178_v11 = vpop.f32.mrf.mxu1  ;;  %v285_v33 = vadd.f32 %v284_v23, %v225_v30 }
  0x9e   :  { %v179_v12 = vadd.f32 %v178_v11, %v99_v10 }
  0xa0   :  { %v229_v25 = vpop.f32.mrf.mxu2 }
  0xa1   :  { %v230_v8 = vadd.f32 %v229_v25, %v1354_v9  ;;  %v452_v9 = vld [vmem:[%s1684_s2] sm:$0xff]  ;;  %v1246_v25 = vmov 0  }
  0xa2   :  { %1244 = vset.pattern.permute.xlu1 %v1246_v25  ;;  %1243 = vset.pattern.permute.xlu0 %v1246_v25 }
  0xa3   :  { %v107_v15 = vpop.f32.mrf.mxu0  ;;  %1245 = vset.pattern.permute.xlu2 %v1246_v25 }
  0xa4   :  { %v290_v27 = vpop.f32.mrf.mxu3 }
  0xa5   :  { %v182_v16 = vpop.f32.mrf.mxu1  ;;  %v291_v23 = vadd.f32 %v290_v27, %v230_v8  ;;  %v448_v27 = vld [vmem:[%s1685_s4 + $0x28] sm:$0xff] }
  0xa6   :  { %v183_v18 = vadd.f32 %v182_v16, %v107_v15  ;;  %487 = vperm.xlu1 %1244, %v448_v27  }
  0xa8   :  { %v234_v32 = vpop.f32.mrf.mxu2 }
  0xa9   :  { %v235_v63 = vadd.f32 %v234_v32, %v179_v12 }
  0xab   :  { %v115_v19 = vpop.f32.mrf.mxu0 }
  0xac   :  { %v296_v36 = vpop.f32.mrf.mxu3 }
  0xad   :  { %v186_v21 = vpop.f32.mrf.mxu1  ;;  %v297_v11 = vadd.f32 %v296_v36, %v235_v63 }
  0xae   :  { %v187_v22 = vadd.f32 %v186_v21, %v115_v19 }
  0xb0   :  { %v239_v39 = vpop.f32.mrf.mxu2 }
  0xb1   :  { %v240_v61 = vadd.f32 %v239_v39, %v183_v18 }
  0xb3   :  { %v123_v13 = vpop.f32.mrf.mxu0 }
  0xb4   :  { %v302_v42 = vpop.f32.mrf.mxu3 }
  0xb5   :  { %v190_v24 = vpop.f32.mrf.mxu1  ;;  %v303_v10 = vadd.f32 %v302_v42, %v240_v61 }
  0xb6   :  { %v191_v26 = vadd.f32 %v190_v24, %v123_v13 }
  0xb8   :  { %v244_v44 = vpop.f32.mrf.mxu2 }
  0xb9   :  { %v245_v58 = vadd.f32 %v244_v44, %v187_v22 }
  0xbb   :  { %v131_v28 = vpop.f32.mrf.mxu0 }
  0xbc   :  { %v308_v46 = vpop.f32.mrf.mxu3 }
  0xbd   :  { %v194_v31 = vpop.f32.mrf.mxu1  ;;  %v309_v0 = vadd.f32 %v308_v46, %v245_v58 }
  0xbe   :  { %v195_v55 = vadd.f32 %v194_v31, %v131_v28 }
  0xc0   :  { %v249_v49 = vpop.f32.mrf.mxu2 }
  0xc1   :  { %v250_v56 = vadd.f32 %v249_v49, %v191_v26  ;;  %v453_v49 = vld [vmem:[%s1684_s2 + $0x8] sm:$0xff] }
  0xc3   :  { %v353_v34 = vpop.f32.mrf.mxu0 }
  0xc4   :  { %v354_v35 = vadd.f32 %v353_v34, %v285_v33  ;;  %v314_v50 = vpop.f32.mrf.mxu3  ;;  %v502_v34 = vsel %vm500_vm2, %v452_v9, 0 }
  0xc5   :  { %v404_v37 = vpop.f32.mrf.mxu1  ;;  %v315_v62 = vadd.f32 %v314_v50, %v250_v56 }
  0xc6   :  { %v1356_v38 = vadd.f32 %v404_v37, %v354_v35 }
  0xc8   :  { %v254_v53 = vpop.f32.mrf.mxu2  ;;  %v435_v50 = vmax.f32 %v1356_v38, 0.0 }
  0xc9   :  { %v255_v59 = vadd.f32 %v254_v53, %v195_v55  ;;  %v450_v53 = vld [vmem:[%s1685_s4 + $0x38] sm:$0xff] }
  0xca   :  { %497 = vperm.xlu0 %1243, %v450_v53  }
  0xcb   :  { %v357_v40 = vpop.f32.mrf.mxu0 }
  0xcc   :  { %v320_v57 = vpop.f32.mrf.mxu3  ;;  %v358_v26 = vadd.f32 %v357_v40, %v291_v23 }
  0xcd   :  { %v1358_v41 = vpop.f32.mrf.mxu1  ;;  %v321_v1 = vadd.f32 %v320_v57, %v255_v59  ;;  %v505_v57 = vsel %vm500_vm2, %v453_v49, 0 }
  0xce   :  { %v409_v35 = vadd.f32 %v1358_v41, %v358_v26 }
  0xd0   :  { %v259_v2 = vpop.f32.mrf.mxu2  ;;  %v436_v46 = vmax.f32 %v409_v35, 0.0 }
  0xd1   :  { %v260_v15 = vadd.f32 %v259_v2, %v199_v5 }
  0xd2   :  { %v1412_v58 = vand.u32 4294901760, %v436_v46 }
  0xd3   :  { %v361_v43 = vpop.f32.mrf.mxu0 }
  0xd4   :  { %v326_v19 = vpop.f32.mrf.mxu3  ;;  %v362_v22 = vadd.f32 %v361_v43, %v297_v11  ;;  %v1441_v5 = vsub.f32 %v436_v46, %v1412_v58 }
  0xd5   :  { %v412_v45 = vpop.f32.mrf.mxu1  ;;  %v327_v24 = vadd.f32 %v326_v19, %v260_v15 }
  0xd6   :  { %v413_v29 = vadd.f32 %v412_v45, %v362_v22  ;;  %v1378_v45 = vand.u32 4294901760, %v502_v34  ;;  %v660_v23 = vand.u32 4294901760, %v1441_v5 }
  0xd8   :  { %v437_v40 = vmax.f32 %v413_v29, 0.0  ;;  %v1409_v56 = vsub.f32 %v502_v34, %v1378_v45  ;;  %v661_v25 = vsub.f32 %v1441_v5, %v660_v23  ;;  %v455_v29 = vld [vmem:[%s1684_s2 + $0x18] sm:$0xff]  ;;  %v449_v34 = vld [vmem:[%s1685_s4 + $0x30] sm:$0xff] }
  0xd9   :  { %v511_v35 = vsel %vm500_vm2, %v455_v29, 0  ;;  %492 = vperm.xlu0 %1243, %v449_v34  }
  0xda   :  { %v1510_v49 = vand.u32 4294901760, %v511_v35 }
  0xdb   :  { %v365_v47 = vpop.f32.mrf.mxu0 }
  0xdc   :  { %v366_v20 = vadd.f32 %v365_v47, %v303_v10  ;;  %v454_v10 = vld [vmem:[%s1684_s2 + $0x10] sm:$0xff]  ;;  %v574_v53 = vsub.f32 %v511_v35, %v1510_v49 }
  0xdd   :  { %v416_v48 = vpop.f32.mrf.mxu1 }
  0xde   :  { %v417_v28 = vadd.f32 %v416_v48, %v366_v20 }
  0xe0   :  { %v438_v36 = vmax.f32 %v417_v28, 0.0 }
  0xe2   :  { %v1380_v47 = vand.u32 4294901760, %v438_v36 }
  0xe3   :  { %v369_v51 = vpop.f32.mrf.mxu0 }
  0xe4   :  { %v370_v6 = vadd.f32 %v369_v51, %v309_v0  ;;  %v1391_v51 = vand.u32 4294901760, %v437_v40  ;;  %v1415_v59 = vsub.f32 %v438_v36, %v1380_v47  ;;  %v662_v36 = vand.u32 4294901760, %v661_v25 }
  0xe5   :  { %v420_v52 = vpop.f32.mrf.mxu1 }
  0xe6   :  { %v421_v12 = vadd.f32 %v420_v52, %v370_v6  ;;  %v1424_v63 = vsub.f32 %v437_v40, %v1391_v51  ;;  %v648_v8 = vand.u32 4294901760, %v1415_v59 }
  0xe8   :  { %v439_v30 = vmax.f32 %v421_v12, 0.0  ;;  %v654_v15 = vand.u32 4294901760, %v1424_v63  ;;  %v649_v12 = vsub.f32 %v1415_v59, %v648_v8 }
  0xea   :  { %v1373_v42 = vand.u32 4294901760, %v439_v30  ;;  %v650_v9 = vand.u32 4294901760, %v649_v12 }
  0xeb   :  { %v373_v54 = vpop.f32.mrf.mxu0 }
  0xec   :  { %v374_v3 = vadd.f32 %v373_v54, %v315_v62  ;;  %v1394_v52 = vsub.f32 %v439_v30, %v1373_v42  ;;  %v447_v54 = vld [vmem:[%s1685_s4 + $0x20] sm:$0xff]  ;;  %v1421_v62 = vand.u32 4294901760, %v435_v50 }
  0xed   :  { %v424_v60 = vpop.f32.mrf.mxu1  ;;  %482 = vperm.xlu1 %1244, %v447_v54  }
  0xee   :  { %v425_v21 = vadd.f32 %v424_v60, %v374_v3  ;;  %v642_v0 = vand.u32 4294901760, %v1394_v52  ;;  %v551_v3 = vand.u32 4294901760, %v1409_v56  ;;  %v1453_v11 = vsub.f32 %v435_v50, %v1421_v62  ;;  %v456_v50 = vld [vmem:[%s1684_s2 + $0x20] sm:$0xff] }
  0xef   :  { %v514_v54 = vsel %vm500_vm2, %v456_v50, 0 }
  0xf0   :  { %v440_v14 = vmax.f32 %v425_v21, 0.0  ;;  %v643_v19 = vsub.f32 %v1394_v52, %v642_v0  ;;  %v552_v20 = vsub.f32 %v1409_v56, %v551_v3 }
  0xf2   :  { %v1371_v37 = vand.u32 4294901760, %v440_v14  ;;  %v644_v26 = vand.u32 4294901760, %v643_v19  ;;  %v553_v28 = vand.u32 4294901760, %v552_v20 }
  0xf3   :  { %v377_v4 = vpop.f32.mrf.mxu0 }
  0xf4   :  { %v378_v7 = vadd.f32 %v377_v4, %v321_v1  ;;  %v1383_v48 = vsub.f32 %v440_v14, %v1371_v37  ;;  %v1437_v4 = vand.u32 4294901760, %v505_v57 }
  0xf5   :  { %v428_v16 = vpop.f32.mrf.mxu1 }
  0xf6   :  { %v429_v18 = vadd.f32 %v428_v16, %v378_v7  ;;  %v636_v61 = vand.u32 4294901760, %v1383_v48  ;;  %v1463_v21 = vsub.f32 %v505_v57, %v1437_v4 }
  0xf8   :  { %v441_v13 = vmax.f32 %v429_v18, 0.0  ;;  %v637_v7 = vsub.f32 %v1383_v48, %v636_v61  ;;  %v508_v18 = vsel %vm500_vm2, %v454_v10, 0  ;;  %v559_v14 = vand.u32 4294901760, %v1463_v21 }
  0xfa   :  { %v1367_v32 = vand.u32 4294901760, %v441_v13  ;;  %v638_v22 = vand.u32 4294901760, %v637_v7  ;;  %v560_v27 = vsub.f32 %v1463_v21, %v559_v14 }
  0xfb   :  { %v381_v17 = vpop.f32.mrf.mxu0 }
  0xfc   :  { %v382_v31 = vadd.f32 %v381_v17, %v327_v24  ;;  %v1376_v43 = vsub.f32 %v441_v13, %v1367_v32  ;;  %v655_v13 = vsub.f32 %v1424_v63, %v654_v15  ;;  %v666_v24 = vand.u32 4294901760, %v1453_v11 }
  0xfd   :  { %v432_v33 = vpop.f32.mrf.mxu1  ;;  %v1481_v17 = vand.u32 4294901760, %v508_v18 }
  0xfe   :  { %v433_v39 = vadd.f32 %v432_v33, %v382_v31  ;;  %v630_v38 = vand.u32 4294901760, %v1376_v43  ;;  %v656_v30 = vand.u32 4294901760, %v655_v13  ;;  %v667_v31 = vsub.f32 %v1453_v11, %v666_v24 }
  0xff   :  { %v566_v33 = vsub.f32 %v508_v18, %v1481_v17 }
 0x100   :  { %v442_v44 = vmax.f32 %v433_v39, 0.0  ;;  %v631_v2 = vsub.f32 %v1376_v43, %v630_v38  ;;  %v443_v39 = vld [vmem:[%s1685_s4] sm:$0xff]  ;;  %v668_v40 = vand.u32 4294901760, %v667_v31 }
 0x101   :  { %v567_v46 = vand.u32 4294901760, %v566_v33  ;;  %462 = vperm.xlu1 %1244, %v443_v39  }
 0x102   :  { %v1385_v41 = vand.u32 4294901760, %v442_v44  ;;  %v632_v16 = vand.u32 4294901760, %v631_v2  ;;  %v459_v2 = vld [vmem:[%s1684_s2 + $0x38] sm:$0xff] }
 0x104   :  { %v1403_v55 = vsub.f32 %v442_v44, %v1385_v41  ;;  %534 = vmatpush.msra.mxu2 %v1385_v41  ;;  %785 = vmatpush.msra.mxu1 %v1385_v41  ;;  %v561_v44 = vand.u32 4294901760, %v560_v27 }
 0x106   :  { %v624_v60 = vand.u32 4294901760, %v1403_v55  ;;  %536 = vmatpush.msra.mxu2 %v1367_v32  ;;  %713 = vmatpush.msra.mxu0 %v1403_v55 }
 0x107   :  { %787 = vmatpush.msra.mxu1 %v1367_v32 }
 0x108   :  { %v625_v1 = vsub.f32 %v1403_v55, %v624_v60  ;;  %538 = vmatpush.msra.mxu2 %v1371_v37  ;;  %716 = vmatpush.msra.mxu0 %v1376_v43  ;;  %v568_v43 = vsub.f32 %v566_v33, %v567_v46  ;;  %v1533_v55 = vand.u32 4294901760, %v514_v54 }
 0x109   :  { %789 = vmatpush.msra.mxu1 %v1371_v37 }
 0x10a   :  { %540 = vmatpush.msra.mxu2 %v1373_v42  ;;  %719 = vmatpush.msra.mxu0 %v1383_v48  ;;  %v626_v6 = vand.u32 4294901760, %v625_v1  ;;  %v444_v48 = vld [vmem:[%s1685_s4 + $0x8] sm:$0xff] }
 0x10b   :  { %791 = vmatpush.msra.mxu1 %v1373_v42  ;;  %467 = vperm.xlu0 %1243, %v444_v48  }
 0x10c   :  { %542 = vmatpush.msra.mxu2 %v1380_v47  ;;  %627 = vmatpush.msra.mxu3 %v626_v6  ;;  %v523_v6 = vsel %vm500_vm2, %v459_v2, 0 }
 0x10d   :  { %722 = vmatpush.msra.mxu0 %v1394_v52  ;;  %793 = vmatpush.msra.mxu1 %v1380_v47  ;;  %v575_v52 = vand.u32 4294901760, %v574_v53  ;;  %v605_v10 = vand.u32 4294901760, %v523_v6 }
 0x10e   :  { %544 = vmatpush.msra.mxu2 %v1391_v51  ;;  %633 = vmatpush.msra.mxu3 %v632_v16 }
 0x10f   :  { %725 = vmatpush.msra.mxu0 %v1415_v59  ;;  %795 = vmatpush.msra.mxu1 %v1391_v51 }
 0x110   :  { %546 = vmatpush.msra.mxu2 %v1412_v58  ;;  %639 = vmatpush.msra.mxu3 %v638_v22  ;;  %v451_v22 = vld [vmem:[%s1685_s4 + $0x40] sm:$0x3] }
 0x111   :  { %728 = vmatpush.msra.mxu0 %v1424_v63  ;;  %797 = vmatpush.msra.mxu1 %v1412_v58 }
 0x112   :  { %548 = vmatpush.msra.mxu2 %v1421_v62  ;;  %645 = vmatpush.msra.mxu3 %v644_v26 }
 0x113   :  { %731 = vmatpush.msra.mxu0 %v1441_v5  ;;  %799 = vmatpush.msra.mxu1 %v1421_v62 }
 0x114   :  { %554 = vmatmul.f32.vlgmr.msra.gmra.mxu2 %v553_v28  ;;  %651 = vmatpush.msra.mxu3 %v650_v9 }
 0x115   :  { %860 = vmatpush.msrb.mxu2 %v624_v60  ;;  %734 = vmatpush.msra.mxu0 %v1453_v11 }
 0x116   :  { %657 = vmatpush.msra.mxu3 %v656_v30  ;;  %737 = vmatmul.f32.vlgmr.msra.gmra.mxu0 %v1409_v56  ;;  %v446_v56 = vld [vmem:[%s1685_s4 + $0x18] sm:$0xff] }
 0x117   :  { %864 = vmatpush.msrb.mxu2 %v630_v38  ;;  %803 = vmatmul.f32.vlgmr.msra.gmra.mxu1 %v551_v3  ;;  %v582_v38 = vsub.f32 %v514_v54, %v1533_v55 }
 0x118   :  { %663 = vmatpush.msra.mxu3 %v662_v36  ;;  %477 = vperm.xlu2 %1245, %v446_v56  }
 0x119   :  { %868 = vmatpush.msrb.mxu2 %v636_v61  ;;  %v583_v59 = vand.u32 4294901760, %v582_v38 }
 0x11a   :  { %669 = vmatpush.msra.mxu3 %v668_v40 }
 0x11b   :  { %872 = vmatpush.msrb.mxu2 %v642_v0  ;;  %671 = vmatmul.f32.vlgmr.msra.gmra.mxu3 %v1378_v45  ;;  %v584_v61 = vsub.f32 %v582_v38, %v583_v59 }
 0x11c   :  { %562 = vmatmul.f32.gmra.mxu2 %v561_v44  ;;  %931 = vmatpush.msrb.mxu3 %v1385_v41  ;;  %v569_v41 = vand.u32 4294901760, %v568_v43 }
 0x11d   :  { %876 = vmatpush.msrb.mxu2 %v648_v8  ;;  %v585_v0 = vand.u32 4294901760, %v584_v61 }
 0x11e   :  { %933 = vmatpush.msrb.mxu3 %v1367_v32  ;;  %742 = vmatmul.f32.gmra.mxu0 %v1463_v21  ;;  %v457_v32 = vld [vmem:[%s1684_s2 + $0x28] sm:$0xff] }
 0x11f   :  { %880 = vmatpush.msrb.mxu2 %v654_v15  ;;  %809 = vmatmul.f32.gmra.mxu1 %v559_v14  ;;  %v517_v57 = vsel %vm500_vm2, %v457_v32, 0  ;;  %v606_v15 = vsub.f32 %v523_v6, %v605_v10 }
 0x120   :  { %935 = vmatpush.msrb.mxu3 %v1371_v37  ;;  %v576_v37 = vsub.f32 %v574_v53, %v575_v52  ;;  %v589_v60 = vand.u32 4294901760, %v517_v57 }
 0x121   :  { %884 = vmatpush.msrb.mxu2 %v660_v23  ;;  %v607_v19 = vand.u32 4294901760, %v606_v15 }
 0x122   :  { %937 = vmatpush.msrb.mxu3 %v1373_v42  ;;  %v577_v42 = vand.u32 4294901760, %v576_v37  ;;  %v590_v63 = vsub.f32 %v517_v57, %v589_v60 }
 0x123   :  { %888 = vmatpush.msrb.mxu2 %v666_v24  ;;  %675 = vmatmul.f32.gmra.mxu3 %v1437_v4  ;;  %v608_v20 = vsub.f32 %v606_v15, %v607_v19 }
 0x124   :  { %570 = vmatmul.f32.gmra.mxu2 %v569_v41  ;;  %939 = vmatpush.msrb.mxu3 %v1380_v47  ;;  %v458_v47 = vld [vmem:[%s1684_s2 + $0x30] sm:$0xff] }
 0x125   :  { %v609_v21 = vand.u32 4294901760, %v608_v20 }
 0x126   :  { %941 = vmatpush.msrb.mxu3 %v1391_v51  ;;  %747 = vmatmul.f32.gmra.mxu0 %v566_v33  ;;  %v445_v51 = vld [vmem:[%s1685_s4 + $0x10] sm:$0xff] }
 0x127   :  { %815 = vmatmul.f32.gmra.mxu1 %v567_v46  ;;  %472 = vperm.xlu2 %1245, %v445_v51  }
 0x128   :  { %943 = vmatpush.msrb.mxu3 %v1412_v58  ;;  %v520_v58 = vsel %vm500_vm2, %v458_v47, 0 }
 0x129   :  { %v597_v1 = vand.u32 4294901760, %v520_v58 }
 0x12a   :  { %945 = vmatpush.msrb.mxu3 %v1421_v62  ;;  %v591_v62 = vand.u32 4294901760, %v590_v63 }
 0x12b   :  { %679 = vmatmul.f32.gmra.mxu3 %v1481_v17  ;;  %v598_v5 = vsub.f32 %v520_v58, %v597_v1 }
 0x12c   :  { %578 = vmatmul.f32.gmra.mxu2 %v577_v42  ;;  %v592_v3 = vsub.f32 %v590_v63, %v591_v62 }
 0x12d   :  { %v599_v8 = vand.u32 4294901760, %v598_v5 }
 0x12e   :  { %752 = vmatmul.f32.gmra.mxu0 %v574_v53  ;;  %v593_v7 = vand.u32 4294901760, %v592_v3 }
 0x12f   :  { %821 = vmatmul.f32.gmra.mxu1 %v575_v52  ;;  %v600_v11 = vsub.f32 %v598_v5, %v599_v8  ;;  %990 = vperm.xlu2 %1245, %v451_v22  }
 0x131   :  { %v601_v16 = vand.u32 4294901760, %v600_v11 }
 0x133   :  { %683 = vmatmul.f32.gmra.mxu3 %v1510_v49 }
 0x134   :  { %586 = vmatmul.f32.gmra.mxu2 %v585_v0 }
 0x136   :  { %757 = vmatmul.f32.gmra.mxu0 %v582_v38 }
 0x137   :  { %827 = vmatmul.f32.gmra.mxu1 %v583_v59 }
 0x13b   :  { %687 = vmatmul.f32.gmra.mxu3 %v1533_v55 }
 0x13c   :  { %594 = vmatmul.f32.gmra.mxu2 %v593_v7  ;;  %v1575_v18 = vpop.permute.xlu0 %497 }
 0x13e   :  { %762 = vmatmul.f32.gmra.mxu0 %v590_v63 }
 0x13f   :  { %833 = vmatmul.f32.gmra.mxu1 %v591_v62 }
 0x143   :  { %691 = vmatmul.f32.gmra.mxu3 %v589_v60 }
 0x144   :  { %602 = vmatmul.f32.gmra.mxu2 %v601_v16 }
 0x146   :  { %767 = vmatmul.f32.gmra.mxu0 %v598_v5 }
 0x147   :  { %839 = vmatmul.f32.gmra.mxu1 %v599_v8 }
 0x14b   :  { %695 = vmatmul.f32.gmra.mxu3 %v597_v1  ;;  %v493_v12 = vpop.permute.xlu0 %492 }
 0x14c   :  { %610 = vmatmul.f32.gmra.mxu2 %v609_v21 }
 0x14e   :  { %772 = vmatmul.f32.gmra.mxu0 %v606_v15 }
 0x14f   :  { %845 = vmatmul.f32.gmra.mxu1 %v607_v19 }
 0x153   :  { %699 = vmatmul.f32.gmra.mxu3 %v605_v10 }
 0x154   :  { %890 = vmatmul.f32.vlgmr.msrb.gmra.mxu2 %v1378_v45 }
 0x15b   :  { %947 = vmatmul.f32.vlgmr.msrb.gmra.mxu3 %v1378_v45  ;;  %v488_v45 = vpop.permute.xlu1 %487 }
 0x15c   :  { %894 = vmatmul.f32.gmra.mxu2 %v1437_v4 }
 0x163   :  { %951 = vmatmul.f32.gmra.mxu3 %v1437_v4  ;;  %v483_v4 = vpop.permute.xlu1 %482 }
 0x164   :  { %898 = vmatmul.f32.gmra.mxu2 %v1481_v17 }
 0x16b   :  { %955 = vmatmul.f32.gmra.mxu3 %v1481_v17 }
 0x16c   :  { %902 = vmatmul.f32.gmra.mxu2 %v1510_v49 }
 0x172   :  { %v478_v26 = vpop.permute.xlu2 %477 }
 0x173   :  { %959 = vmatmul.f32.gmra.mxu3 %v1510_v49  ;;  %v463_v13 = vpop.permute.xlu1 %462 }
 0x174   :  { %906 = vmatmul.f32.gmra.mxu2 %v1533_v55 }
 0x17b   :  { %963 = vmatmul.f32.gmra.mxu3 %v1533_v55 }
 0x17c   :  { %910 = vmatmul.f32.gmra.mxu2 %v589_v60 }
 0x17d   :  { %v468_v29 = vpop.permute.xlu0 %467 }
 0x181   :  { %v473_v36 = vpop.permute.xlu2 %472 }
 0x183   :  { %967 = vmatmul.f32.gmra.mxu3 %v589_v60 }
 0x184   :  { %914 = vmatmul.f32.gmra.mxu2 %v597_v1 }
 0x18b   :  { %971 = vmatmul.f32.gmra.mxu3 %v597_v1 }
 0x18c   :  { %918 = vmatmul.f32.gmra.mxu2 %v605_v10 }
 0x193   :  { %975 = vmatmul.f32.gmra.mxu3 %v605_v10  ;;  %v738_v14 = vpop.f32.mrf.mxu0 }
 0x194   :  { %v804_v25 = vpop.f32.mrf.mxu1 }
 0x197   :  { %v555_v23 = vpop.f32.mrf.mxu2 }
 0x198   :  { %v556_v24 = vadd.f32 %v555_v23, %v463_v13 }
 0x19b   :  { %v743_v60 = vpop.f32.mrf.mxu0 }
 0x19c   :  { %v810_v47 = vpop.f32.mrf.mxu1 }
 0x19e   :  { %v672_v28 = vpop.f32.mrf.mxu3 }
 0x19f   :  { %v563_v17 = vpop.f32.mrf.mxu2  ;;  %v673_v9 = vadd.f32 %v672_v28, %v556_v24 }
 0x1a0   :  { %v564_v27 = vadd.f32 %v563_v17, %v468_v29 }
 0x1a1   :  { %v739_v30 = vadd.f32 %v738_v14, %v673_v9 }
 0x1a3   :  { %v805_v31 = vadd.f32 %v804_v25, %v739_v30  ;;  %v748_v58 = vpop.f32.mrf.mxu0 }
 0x1a4   :  { %v816_v0 = vpop.f32.mrf.mxu1 }
 0x1a6   :  { %v676_v33 = vpop.f32.mrf.mxu3 }
 0x1a7   :  { %v571_v34 = vpop.f32.mrf.mxu2  ;;  %v1580_v35 = vadd.f32 %v676_v33, %v564_v27 }
 0x1a8   :  { %v572_v39 = vadd.f32 %v571_v34, %v473_v36 }
 0x1a9   :  { %v744_v36 = vadd.f32 %v743_v60, %v1580_v35  ;;  %v987_v35 = vld [vmem:[%s1686_s3] sm:$0x3] }
 0x1ab   :  { %v753_v3 = vpop.f32.mrf.mxu0 }
 0x1ac   :  { %v822_v7 = vpop.f32.mrf.mxu1 }
 0x1ae   :  { %v680_v40 = vpop.f32.mrf.mxu3 }
 0x1af   :  { %v579_v44 = vpop.f32.mrf.mxu2  ;;  %v681_v46 = vadd.f32 %v680_v40, %v572_v39 }
 0x1b0   :  { %v580_v49 = vadd.f32 %v579_v44, %v478_v26 }
 0x1b1   :  { %v749_v30 = vadd.f32 %v748_v58, %v681_v46  ;;  %v811_v46 = vadd.f32 %v810_v47, %v744_v36 }
 0x1b3   :  { %v758_v8 = vpop.f32.mrf.mxu0 }
 0x1b4   :  { %v828_v15 = vpop.f32.mrf.mxu1 }
 0x1b6   :  { %v684_v50 = vpop.f32.mrf.mxu3 }
 0x1b7   :  { %v587_v43 = vpop.f32.mrf.mxu2  ;;  %v685_v53 = vadd.f32 %v684_v50, %v580_v49 }
 0x1b8   :  { %v588_v48 = vadd.f32 %v587_v43, %v483_v4  ;;  %v817_v43 = vadd.f32 %v816_v0, %v749_v30 }
 0x1b9   :  { %v754_v17 = vadd.f32 %v753_v3, %v685_v53 }
 0x1bb   :  { %v763_v20 = vpop.f32.mrf.mxu0  ;;  %v823_v39 = vadd.f32 %v822_v7, %v754_v17 }
 0x1bc   :  { %v834_v21 = vpop.f32.mrf.mxu1 }
 0x1be   :  { %v688_v54 = vpop.f32.mrf.mxu3 }
 0x1bf   :  { %v595_v41 = vpop.f32.mrf.mxu2  ;;  %v689_v52 = vadd.f32 %v688_v54, %v588_v48 }
 0x1c0   :  { %v596_v55 = vadd.f32 %v595_v41, %v488_v45 }
 0x1c1   :  { %v759_v14 = vadd.f32 %v758_v8, %v689_v52 }
 0x1c3   :  { %v768_v22 = vpop.f32.mrf.mxu0  ;;  %v829_v27 = vadd.f32 %v828_v15, %v759_v14 }
 0x1c6   :  { %v692_v32 = vpop.f32.mrf.mxu3 }
 0x1c7   :  { %v603_v37 = vpop.f32.mrf.mxu2  ;;  %v693_v38 = vadd.f32 %v692_v32, %v596_v55 }
 0x1c8   :  { %v604_v56 = vadd.f32 %v603_v37, %v493_v12  ;;  %v840_v12 = vpop.f32.mrf.mxu1 }
 0x1c9   :  { %v764_v13 = vadd.f32 %v763_v20, %v693_v38 }
 0x1cb   :  { %v835_v9 = vadd.f32 %v834_v21, %v764_v13 }
 0x1ce   :  { %v696_v57 = vpop.f32.mrf.mxu3 }
 0x1cf   :  { %v611_v42 = vpop.f32.mrf.mxu2  ;;  %v697_v59 = vadd.f32 %v696_v57, %v604_v56 }
 0x1d0   :  { %v612_v24 = vadd.f32 %v611_v42, %v1575_v18  ;;  %v846_v48 = vpop.f32.mrf.mxu1 }
 0x1d1   :  { %v769_v26 = vadd.f32 %v768_v22, %v697_v59 }
 0x1d3   :  { %v841_v25 = vadd.f32 %v840_v12, %v769_v26 }
 0x1d6   :  { %v700_v61 = vpop.f32.mrf.mxu3 }
 0x1d7   :  { %v891_v63 = vpop.f32.mrf.mxu2  ;;  %v701_v29 = vadd.f32 %v700_v61, %v612_v24 }
 0x1d8   :  { %v892_v51 = vadd.f32 %v891_v63, %v805_v31  ;;  %v773_v31 = vpop.f32.mrf.mxu0  ;;  %v994_v63 = vsel %vm500_vm2, %v987_v35, 0 }
 0x1d9   :  { %v774_v44 = vadd.f32 %v773_v31, %v701_v29 }
 0x1db   :  { %v847_v32 = vadd.f32 %v846_v48, %v774_v44 }
 0x1de   :  { %v948_v62 = vpop.f32.mrf.mxu3 }
 0x1df   :  { %v895_v1 = vpop.f32.mrf.mxu2  ;;  %v1582_v2 = vadd.f32 %v948_v62, %v892_v51 }
 0x1e0   :  { %v896_v57 = vadd.f32 %v895_v1, %v811_v46  ;;  %v1599_v1 = vand.u32 4294901760, %v994_v63  ;;  %v991_v46 = vpop.permute.xlu2 %990 }
 0x1e1   :  { %v979_v15 = vmax.f32 %v1582_v2, 0.0 }
 0x1e6   :  { %v952_v5 = vpop.f32.mrf.mxu3 }
 0x1e7   :  { %v899_v6 = vpop.f32.mrf.mxu2  ;;  %v953_v51 = vadd.f32 %v952_v5, %v896_v57 }
 0x1e8   :  { %v900_v52 = vadd.f32 %v899_v6, %v817_v43 }
 0x1e9   :  { %v980_v8 = vmax.f32 %v953_v51, 0.0 }
 0x1ee   :  { %v956_v10 = vpop.f32.mrf.mxu3 }
 0x1ef   :  { %v903_v11 = vpop.f32.mrf.mxu2  ;;  %v957_v56 = vadd.f32 %v956_v10, %v900_v52 }
 0x1f0   :  { %v904_v54 = vadd.f32 %v903_v11, %v823_v39 }
 0x1f1   :  { %v981_v62 = vmax.f32 %v957_v56, 0.0 }
 0x1f6   :  { %v960_v16 = vpop.f32.mrf.mxu3 }
 0x1f7   :  { %v907_v19 = vpop.f32.mrf.mxu2  ;;  %v961_v37 = vadd.f32 %v960_v16, %v904_v54  ;;  %v1609_v16 = vand.u32 4294901760, %v981_v62 }
 0x1f8   :  { %v908_v49 = vadd.f32 %v907_v19, %v829_v27 }
 0x1f9   :  { %v982_v58 = vmax.f32 %v961_v37, 0.0  ;;  %v1631_v13 = vsub.f32 %v981_v62, %v1609_v16 }
 0x1fb   :  { %v1601_v10 = vand.u32 4294901760, %v982_v58 }
 0x1fd   :  { %v1624_v2 = vsub.f32 %v982_v58, %v1601_v10 }
 0x1fe   :  { %v964_v45 = vpop.f32.mrf.mxu3 }
 0x1ff   :  { %v911_v4 = vpop.f32.mrf.mxu2  ;;  %v965_v53 = vadd.f32 %v964_v45, %v908_v49  ;;  %v1619_v45 = vsub.f32 %v994_v63, %v1599_v1  ;;  %v1063_v29 = vand.u32 4294901760, %v1624_v2 }
 0x200   :  { %v912_v33 = vadd.f32 %v911_v4, %v835_v9  ;;  %v1621_v4 = vand.u32 4294901760, %v980_v8 }
 0x201   :  { %v983_v42 = vmax.f32 %v965_v53, 0.0  ;;  %v1022_v14 = vand.u32 4294901760, %v1619_v45  ;;  %v1064_v39 = vsub.f32 %v1624_v2, %v1063_v29 }
 0x202   :  { %v1074_v17 = vsub.f32 %v980_v8, %v1621_v4 }
 0x203   :  { %v1594_v3 = vand.u32 4294901760, %v983_v42  ;;  %v1065_v43 = vand.u32 4294901760, %v1064_v39 }
 0x205   :  { %v1612_v19 = vsub.f32 %v983_v42, %v1594_v3 }
 0x206   :  { %v968_v23 = vpop.f32.mrf.mxu3 }
 0x207   :  { %v915_v28 = vpop.f32.mrf.mxu2  ;;  %v969_v50 = vadd.f32 %v968_v23, %v912_v33  ;;  %v1628_v23 = vand.u32 4294901760, %v979_v15  ;;  %v1023_v33 = vsub.f32 %v1619_v45, %v1022_v14 }
 0x208   :  { %v916_v34 = vadd.f32 %v915_v28, %v841_v25  ;;  %v1057_v28 = vand.u32 4294901760, %v1612_v19 }
 0x209   :  { %v984_v38 = vmax.f32 %v969_v50, 0.0  ;;  %v1080_v30 = vsub.f32 %v979_v15, %v1628_v23  ;;  %v1024_v49 = vand.u32 4294901760, %v1023_v33 }
 0x20a   :  { %v1058_v27 = vsub.f32 %v1612_v19, %v1057_v28 }
 0x20b   :  { %v1592_v0 = vand.u32 4294901760, %v984_v38 }
 0x20c   :  { %v1059_v44 = vand.u32 4294901760, %v1058_v27 }
 0x20d   :  { %v1604_v11 = vsub.f32 %v984_v38, %v1592_v0 }
 0x20e   :  { %v972_v40 = vpop.f32.mrf.mxu3 }
 0x20f   :  { %v973_v18 = vadd.f32 %v972_v40, %v916_v34  ;;  %v919_v55 = vpop.f32.mrf.mxu2  ;;  %v1051_v12 = vand.u32 4294901760, %v1604_v11  ;;  %v1069_v34 = vand.u32 4294901760, %v1631_v13  ;;  %v1075_v40 = vand.u32 4294901760, %v1074_v17 }
 0x210   :  { %v920_v59 = vadd.f32 %v919_v55, %v847_v32 }
 0x211   :  { %v985_v41 = vmax.f32 %v973_v18, 0.0  ;;  %v1052_v25 = vsub.f32 %v1604_v11, %v1051_v12  ;;  %v1070_v50 = vsub.f32 %v1631_v13, %v1069_v34  ;;  %v1081_v18 = vand.u32 4294901760, %v1080_v30 }
 0x212   :  { %v1076_v48 = vsub.f32 %v1074_v17, %v1075_v40 }
 0x213   :  { %v1589_v60 = vand.u32 4294901760, %v985_v41  ;;  %v1053_v36 = vand.u32 4294901760, %v1052_v25  ;;  %v1071_v54 = vand.u32 4294901760, %v1070_v50  ;;  %v1082_v53 = vsub.f32 %v1080_v30, %v1081_v18 }
 0x215   :  { %v1597_v6 = vsub.f32 %v985_v41, %v1589_v60  ;;  %v1077_v41 = vand.u32 4294901760, %v1076_v48  ;;  %v1083_v52 = vand.u32 4294901760, %v1082_v53 }
 0x216   :  { %v976_v61 = vpop.f32.mrf.mxu3 }
 0x217   :  { %v977_v47 = vadd.f32 %v976_v61, %v920_v59  ;;  %v1045_v21 = vand.u32 4294901760, %v1597_v6 }
 0x219   :  { %v986_v7 = vmax.f32 %v977_v47, 0.0  ;;  %v1046_v26 = vsub.f32 %v1597_v6, %v1045_v21 }
 0x21b   :  { %v1606_v5 = vand.u32 4294901760, %v986_v7  ;;  %v1047_v31 = vand.u32 4294901760, %v1046_v26 }
 0x21d   :  { %v1038_v20 = vsub.f32 %v986_v7, %v1606_v5  ;;  %1005 = vmatpush.msrb.mxu0 %v1606_v5  ;;  %1137 = vmatpush.msra.mxu3 %v1606_v5 }
 0x21f   :  { %v1039_v22 = vand.u32 4294901760, %v1038_v20  ;;  %1007 = vmatpush.msrb.mxu0 %v1589_v60  ;;  %1100 = vmatpush.msra.mxu2 %v1038_v20 }
 0x220   :  { %1139 = vmatpush.msra.mxu3 %v1589_v60 }
 0x221   :  { %v1040_v24 = vsub.f32 %v1038_v20, %v1039_v22  ;;  %1009 = vmatpush.msrb.mxu0 %v1592_v0  ;;  %1103 = vmatpush.msra.mxu2 %v1597_v6 }
 0x222   :  { %1141 = vmatpush.msra.mxu3 %v1592_v0 }
 0x223   :  { %1011 = vmatpush.msrb.mxu0 %v1594_v3  ;;  %1106 = vmatpush.msra.mxu2 %v1604_v11  ;;  %v1041_v9 = vand.u32 4294901760, %v1040_v24 }
 0x224   :  { %1143 = vmatpush.msra.mxu3 %v1594_v3 }
 0x225   :  { %1013 = vmatpush.msrb.mxu0 %v1601_v10  ;;  %1042 = vmatpush.msrb.mxu1 %v1041_v9 }
 0x226   :  { %1109 = vmatpush.msra.mxu2 %v1612_v19  ;;  %1145 = vmatpush.msra.mxu3 %v1601_v10 }
 0x227   :  { %1015 = vmatpush.msrb.mxu0 %v1609_v16  ;;  %1048 = vmatpush.msrb.mxu1 %v1047_v31 }
 0x228   :  { %1112 = vmatpush.msra.mxu2 %v1624_v2  ;;  %1147 = vmatpush.msra.mxu3 %v1609_v16 }
 0x229   :  { %1017 = vmatpush.msrb.mxu0 %v1621_v4  ;;  %1054 = vmatpush.msrb.mxu1 %v1053_v36 }
 0x22a   :  { %1115 = vmatpush.msra.mxu2 %v1631_v13  ;;  %1149 = vmatpush.msra.mxu3 %v1621_v4 }
 0x22b   :  { %1019 = vmatpush.msrb.mxu0 %v1628_v23  ;;  %1060 = vmatpush.msrb.mxu1 %v1059_v44 }
 0x22c   :  { %1118 = vmatpush.msra.mxu2 %v1074_v17  ;;  %1151 = vmatpush.msra.mxu3 %v1628_v23 }
 0x22d   :  { %1025 = vmatmul.f32.vlgmr.msrb.gmra.mxu0 %v1024_v49  ;;  %1066 = vmatpush.msrb.mxu1 %v1065_v43 }
 0x22e   :  { %1170 = vmatpush.msra.mxu0 %v1039_v22  ;;  %1121 = vmatpush.msra.mxu2 %v1080_v30 }
 0x22f   :  { %1072 = vmatpush.msrb.mxu1 %v1071_v54  ;;  %1124 = vmatmul.f32.vlgmr.msra.gmra.mxu2 %v1619_v45 }
 0x230   :  { %1174 = vmatpush.msra.mxu0 %v1045_v21  ;;  %1155 = vmatmul.f32.vlgmr.msra.gmra.mxu3 %v1022_v14 }
 0x231   :  { %1078 = vmatpush.msrb.mxu1 %v1077_v41 }
 0x232   :  { %1178 = vmatpush.msra.mxu0 %v1051_v12 }
 0x233   :  { %1084 = vmatpush.msrb.mxu1 %v1083_v52 }
 0x234   :  { %1182 = vmatpush.msra.mxu0 %v1057_v28  ;;  %1086 = vmatmul.f32.vlgmr.msrb.gmra.mxu1 %v1599_v1 }
 0x235   :  { %1213 = vmatpush.msra.mxu1 %v1606_v5 }
 0x236   :  { %1186 = vmatpush.msra.mxu0 %v1063_v29 }
 0x237   :  { %1215 = vmatpush.msra.mxu1 %v1589_v60 }
 0x238   :  { %1190 = vmatpush.msra.mxu0 %v1069_v34 }
 0x239   :  { %1217 = vmatpush.msra.mxu1 %v1592_v0 }
 0x23a   :  { %1194 = vmatpush.msra.mxu0 %v1075_v40 }
 0x23b   :  { %1219 = vmatpush.msra.mxu1 %v1594_v3 }
 0x23c   :  { %1198 = vmatpush.msra.mxu0 %v1081_v18 }
 0x23d   :  { %1200 = vmatmul.f32.vlgmr.msra.gmra.mxu0 %v1599_v1  ;;  %1221 = vmatpush.msra.mxu1 %v1601_v10 }
 0x23f   :  { %1223 = vmatpush.msra.mxu1 %v1609_v16 }
 0x241   :  { %1225 = vmatpush.msra.mxu1 %v1621_v4 }
 0x243   :  { %1227 = vmatpush.msra.mxu1 %v1628_v23 }
 0x244   :  { %1229 = vmatmul.f32.vlgmr.msra.gmra.mxu1 %v1599_v1 }
 0x2aa   :  { %v1026_v55 = vpop.f32.mrf.mxu0 }
 0x2ab   :  { %v1027_v37 = vadd.f32 %v1026_v55, %v991_v46 }
 0x2b1   :  { %v1087_v32 = vpop.f32.mrf.mxu1 }
 0x2b2   :  { %v1088_v38 = vadd.f32 %v1087_v32, %v1027_v37  ;;  %v1125_v35 = vpop.f32.mrf.mxu2 }
 0x2b3   :  { %v1156_v57 = vpop.f32.mrf.mxu3 }
 0x2b4   :  { %v1126_v56 = vadd.f32 %v1125_v35, %v1088_v38 }
 0x2b6   :  { %v1157_v42 = vadd.f32 %v1156_v57, %v1126_v56 }
 0x2ba   :  { %v1201_v59 = vpop.f32.mrf.mxu0 }
 0x2bb   :  { %v1202_v60 = vadd.f32 %v1201_v59, %v1157_v42 }
 0x2c1   :  { %v1230_v61 = vpop.f32.mrf.mxu1 }
 0x2c2   :  { %v1231_v63 = vadd.f32 %v1230_v61, %v1202_v60 }
 0x2c4   :  { %1233 = vst [vmem:[%s1687_s5] sm:$0x3] %v1231_v63 }

</bundles_post_ra>
